<compile_context>
chip_gen: v5e
topology: v5e:2x2
jax: 0.10.0
libtpu: 0.0.40
codegen_flags: <defaults>
</compile_context>

<pallas_src>
import functools

import jax
import jax.numpy as jnp
from jax.experimental import pallas as pl
from jax.experimental.pallas import tpu as pltpu


def _round_up(x, m):
    return ((x + m - 1) // m) * m


def _vmem_limit(nbytes):
    # Generous headroom, clamped to the v7x physical 64 MiB per-core VMEM.
    return int(min(max(2 * nbytes, 32 << 20), 64 << 20))


# ----------------- Kernel 1: edge projection  Y' = Y @ W^T ------------------

def _edge_proj_kernel(y_ref, w_ref, yp_ref):
    yp_ref[...] = jnp.dot(
        y_ref[...], w_ref[...], preferred_element_type=jnp.float32
    ).astype(yp_ref.dtype)


# -------- Kernel 2: block-sparse scatter-add + residual + activation --------

def _scatter_kernel(first_ref, num_ref, x_ref, src_ref, yp_ref, out_ref,
                    acc_ref, *, apply_relu, tm, sub):
    i = pl.program_id(0)            # node-row tile (parallel axis)
    k = pl.program_id(1)            # offset into this row tile's edge-tile range

    @pl.when(k == 0)
    def _():
        acc_ref[...] = jnp.zeros_like(acc_ref)

    # Only edge tiles that actually hold this row tile's (sorted) edges do
    # work; other steps are skipped (and their index_map is clamped to the
    # previously fetched block, so no DMA is issued either).
    @pl.when(k < num_ref[i])
    def _():
        te = src_ref.shape[1]
        # (tm, 1) iota broadcast against the (1, sub) src chunk: no (tm, te)
        # int32 iota intermediate is ever materialized.
        row_ids = i * tm + jax.lax.broadcasted_iota(jnp.int32, (tm, 1), 0)
        for s0 in range(0, te, sub):            # sub-chunked one-hot matmul
            onehot = (row_ids == src_ref[:, s0:s0 + sub]).astype(jnp.bfloat16)
            acc_ref[...] += jnp.dot(onehot, yp_ref[s0:s0 + sub, :],
                                    preferred_element_type=jnp.float32)

    # Epilogue once per node tile: residual add + activation + lane-dense store.
    @pl.when(k == pl.num_programs(1) - 1)
    def _():
        out = x_ref[...].astype(jnp.float32) + acc_ref[...]
        if apply_relu:
            out = jnp.maximum(out, 0.0)
        out_ref[...] = out.astype(out_ref.dtype)


# ----------------- Wrapper ---------------------------------------------------

def graph_sum_edge_conv(x, y, edge_index, w, *, activation=None,
                        tm=1024, te=2048, sub=512, te_proj=None):
    """Forward of GraphSumEdgeConv.

    x:          (N, Fin)    node features
    y:          (E, Fin)    edge features
    edge_index: (E, 2)      int; column 0 is the source node of each edge
    w:          (Fout, Fin) nn.Linear weight (bias-free), Fout == Fin
    activation: None or "relu" (fused); any other callable is applied after.
    Returns (X_prime (N, Fout), Y_prime (E, Fout)).
    """
    n, fin = x.shape
    e, fin_y = y.shape
    fout, fin_w = w.shape
    assert fin_y == fin and fin_w == fin
    # The module's index_add_ of Y_prime into an (N, Fin) buffer requires it:
    assert fout == fin, "GraphSumEdgeConv requires out_features == in_features"
    assert tm % 8 == 0 and te % 128 == 0

    sub = min(sub, te)
    if te % sub != 0 or sub % 128 != 0:
        sub = te

    f_pad = _round_up(max(fin, fout), 128)      # lane-dense feature dim
    n_pad = _round_up(n, tm)
    n_tiles = n_pad // tm
    if te_proj is None:                          # kernel-1 (streaming) edge tile
        te_proj = min(te * max(1, 2048 // te), _round_up(e, te))
    assert te_proj % te == 0
    e_pad = _round_up(e, te_proj)
    e_tiles = e_pad // te

    # ---- zero-pad only when needed (skip extra HBM passes when aligned) ----
    x_p = x if (n_pad, f_pad) == x.shape else (
        jnp.zeros((n_pad, f_pad), x.dtype).at[:n, :fin].set(x))
    y_p = y if (e_pad, f_pad) == y.shape else (
        jnp.zeros((e_pad, f_pad), y.dtype).at[:e, :fin].set(y))
    w_p = w.T if (fin, fout) == (f_pad, f_pad) else (
        jnp.zeros((f_pad, f_pad), w.dtype).at[:fin, :fout].set(w.T))

    # ---- Kernel 1: Y' = Y @ W^T, streamed over large edge-row tiles ---------
    vmem1 = (2 * te_proj * f_pad * (jnp.dtype(y.dtype).itemsize + 4)
             + 2 * f_pad * f_pad * 4 + (2 << 20))
    yp_full = pl.pallas_call(
        _edge_proj_kernel,
        out_shape=jax.ShapeDtypeStruct((e_pad, f_pad), jnp.float32),
        grid_spec=pltpu.PrefetchScalarGridSpec(
            num_scalar_prefetch=0,
            grid=(e_pad // te_proj,),
            in_specs=[
                pl.BlockSpec((te_proj, f_pad), lambda ei: (ei, 0)),
                pl.BlockSpec((f_pad, f_pad), lambda ei: (0, 0)),
            ],
            out_specs=pl.BlockSpec((te_proj, f_pad), lambda ei: (ei, 0)),
        ),
        compiler_params=pltpu.CompilerParams(
            dimension_semantics=("parallel",),
            vmem_limit_bytes=_vmem_limit(vmem1)),
    )(y_p, w_p)

    # ---- XLA-side prep for the block-sparse scatter --------------------------
    src = edge_index[:, 0].astype(jnp.int32)
    perm = jnp.argsort(src)                                  # sort edges by src
    src_sorted = src[perm]
    if e_pad == e:
        src_sorted_p, perm_p = src_sorted, perm
    else:
        # Padded edges: sentinel src (matches no row, n_pad > any row id) and a
        # zero Y' row (row e of yp_full came from zero-padded y).
        src_sorted_p = jnp.concatenate(
            [src_sorted, jnp.full((e_pad - e,), n_pad, jnp.int32)])
        perm_p = jnp.concatenate(
            [perm, jnp.full((e_pad - e,), e, perm.dtype)])
    src_rows = src_sorted_p.reshape(1, e_pad)
    # Sorted bf16 copy of Y' for the scatter matmul (halves its HBM traffic and
    # feeds the MXU bf16-native operands); returned Y' stays f32.
    yp_sorted = jnp.take(yp_full, perm_p, axis=0).astype(jnp.bfloat16)

    # Per node-row-tile contiguous edge range -> (first edge tile, #edge tiles).
    boundaries = jnp.arange(n_tiles + 1, dtype=jnp.int32) * tm
    cuts = jnp.searchsorted(src_sorted, boundaries, side="left").astype(jnp.int32)
    lo, hi = cuts[:-1], cuts[1:]
    first_tile = (lo // te).astype(jnp.int32)
    num_tiles = jnp.where(hi > lo, (hi - 1) // te - first_tile + 1, 0)
    num_tiles = num_tiles.astype(jnp.int32)

    try:      # size the 2nd grid axis from the data when running eagerly
        k_steps = max(int(jnp.max(num_tiles)), 1)
    except (jax.errors.ConcretizationTypeError,
            jax.errors.TracerIntegerConversionError):
        k_steps = e_tiles                        # dense upper bound under jit

    # ---- Kernel 2: X' = act(X + block-sparse scatter_add(src, Y')) ----------
    e_tiles_m1 = e_tiles - 1

    def _x_map(i, k, first, num):
        return (i, 0)

    def _src_map(i, k, first, num):
        return (0, jnp.minimum(first[i] + k, e_tiles_m1))

    def _yp_map(i, k, first, num):
        return (jnp.minimum(first[i] + k, e_tiles_m1), 0)

    out_bpe = jnp.dtype(x.dtype).itemsize
    vmem2 = (2 * te * f_pad * 2                 # sorted Y' (bf16), dbl-buffered
             + 2 * tm * f_pad * 4               # X tiles
             + 2 * tm * f_pad * out_bpe         # out tiles
             + tm * f_pad * 4                   # f32 accumulator
             + 2 * te * 4 + 4 * tm * sub        # src row + one-hot temps
             + (2 << 20))
    flops = 2 * n_tiles * k_steps * tm * te * f_pad
    bytes_accessed = int(n_pad * f_pad * (4 + out_bpe)
                         + n_tiles * k_steps * te * (2 * f_pad + 4))

    xp_pad = pl.pallas_call(
        functools.partial(_scatter_kernel, apply_relu=(activation == "relu"),
                          tm=tm, sub=sub),
        out_shape=jax.ShapeDtypeStruct((n_pad, f_pad), x.dtype),
        grid_spec=pltpu.PrefetchScalarGridSpec(
            num_scalar_prefetch=2,
            grid=(n_tiles, k_steps),
            in_specs=[
                pl.BlockSpec((tm, f_pad), _x_map),      # X tile
                pl.BlockSpec((1, te), _src_map),        # sorted src ids
                pl.BlockSpec((te, f_pad), _yp_map),     # sorted Y' tile (bf16)
            ],
            out_specs=pl.BlockSpec((tm, f_pad), _x_map),
            scratch_shapes=[pltpu.VMEM((tm, f_pad), jnp.float32)],
        ),
        compiler_params=pltpu.CompilerParams(
            dimension_semantics=("parallel", "arbitrary"),
            vmem_limit_bytes=_vmem_limit(vmem2)),
        cost_estimate=pl.CostEstimate(flops=flops, transcendentals=0,
                                      bytes_accessed=bytes_accessed),
    )(first_tile, num_tiles, x_p, src_rows, yp_sorted)

    x_out = xp_pad[:n, :fout]
    y_out = yp_full[:e, :fout]
    if activation is not None and activation != "relu" and callable(activation):
        x_out = activation(x_out)               # non-relu activations: unfused
    return x_out, y_out


# ------------------- Pure-JAX reference + test -------------------------------

def _reference(x, y, edge_index, w, activation=None):
    yp = y @ w.T
    n = x.shape[0]
    agg = jnp.zeros((n, yp.shape[1]), jnp.float32).at[edge_index[:, 0]].add(yp)
    xp = x + agg
    if activation == "relu":
        xp = jnp.maximum(xp, 0.0)
    return xp, yp


if __name__ == "__main__":
    key = jax.random.PRNGKey(0)
    k_x, k_y, k_e, k_w = jax.random.split(key, 4)

    num_nodes, num_edges = 200, 1000
    in_features = out_features = 32

    x = jax.random.normal(k_x, (num_nodes, in_features), dtype=jnp.float32)
    y = jax.random.normal(k_y, (num_edges, in_features), dtype=jnp.float32)
    edge_index = jax.random.randint(
        k_e, (num_edges, 2), 0, num_nodes, dtype=jnp.int32)

    # nn.Linear(Fin, Fout, bias=False) default init: U(-1/sqrt(Fin), 1/sqrt(Fin))
    bound = 1.0 / in_features ** 0.5
    w = jax.random.uniform(k_w, (out_features, in_features),
                           minval=-bound, maxval=bound, dtype=jnp.float32)

    # Small tiles so this tiny example still exercises multiple node tiles,
    # multiple edge tiles per row tile, the skip/clamp path and the sub-chunk
    # loop; use the larger defaults (tm=1024, te=2048) for real graphs.
    x_prime, y_prime = graph_sum_edge_conv(
        x, y, edge_index, w, activation="relu", tm=128, te=256, sub=128)
    jax.block_until_ready((x_prime, y_prime))

    xp_ref, yp_ref = _reference(x, y, edge_index, w, activation="relu")
    # bf16-consistent scatter reference (the kernel feeds the scatter matmul
    # bf16 Y' operands with f32 accumulation).
    agg_bf16 = jnp.zeros((num_nodes, out_features), jnp.float32).at[
        edge_index[:, 0]].add(y_prime.astype(jnp.bfloat16).astype(jnp.float32))
    xp_ref_bf16 = jnp.maximum(x + agg_bf16, 0.0)

    assert x_prime.shape == (num_nodes, out_features)
    assert y_prime.shape == (num_edges, out_features)
    assert jnp.allclose(y_prime, yp_ref, atol=1e-4, rtol=1e-4)
    assert jnp.allclose(x_prime, xp_ref_bf16, atol=1e-4, rtol=1e-4)
    assert jnp.allclose(x_prime, xp_ref, atol=5e-2, rtol=5e-2)

    print("KERNEL_OK")
</pallas_src>

<mosaic_0001>
module attributes {stable_mosaic.version = 11 : i64} {
  func.func @_edge_proj_kernel(%arg0: i32, %arg1: memref<1024x128xf32, #tpu.memory_space<vmem>>, %arg2: memref<128x128xf32, #tpu.memory_space<vmem>>, %arg3: memref<1024x128xf32, #tpu.memory_space<vmem>>) attributes {dimension_semantics = [#tpu.dimension_semantics<parallel>], iteration_bounds = array<i64: 1>, scalar_prefetch = 0 : i64, scratch_operands = 0 : i64, tpu.core_type = #tpu.core_type<tc>, window_params = [{transform_indices = @transform_0, window_bounds = array<i64: 1024, 128>}, {pipeline_mode = #tpu.pipeline_mode<synchronous>, transform_indices = @transform_1, window_bounds = array<i64: 128, 128>}, {transform_indices = @transform_2, window_bounds = array<i64: 1024, 128>}]} {
    %c0 = arith.constant 0 : index
    %c0_0 = arith.constant 0 : index
    %0 = vector.load %arg1[%c0, %c0_0] : memref<1024x128xf32, #tpu.memory_space<vmem>>, vector<1024x128xf32>
    %c0_1 = arith.constant 0 : index
    %c0_2 = arith.constant 0 : index
    %1 = vector.load %arg2[%c0_1, %c0_2] : memref<128x128xf32, #tpu.memory_space<vmem>>, vector<128x128xf32>
    %cst = arith.constant dense<0.000000e+00> : vector<1024x128xf32>
    %2 = tpu.matmul %0, %1, %cst {dimension_numbers = #tpu.dot_dimension_numbers<[1], [0], [0], [1], [0, 0, 1, 1], [], []>} : vector<1024x128xf32>, vector<128x128xf32>, vector<1024x128xf32> -> vector<1024x128xf32>
    %c0_3 = arith.constant 0 : index
    %c0_4 = arith.constant 0 : index
    %3 = vector.load %arg3[%c0_3, %c0_4] : memref<1024x128xf32, #tpu.memory_space<vmem>>, vector<1024x128xf32>
    tpu.vector_store %arg3[%c0_3, %c0_4], %2 {strides = array<i32>} : memref<1024x128xf32, #tpu.memory_space<vmem>>, vector<1024x128xf32>,
    return
  }
  func.func @transform_0(%arg0: i32) -> (i32, i32) {
    %c0_i32 = arith.constant 0 : i32
    %c0_i32_0 = arith.constant 0 : i32
    return %arg0, %c0_i32 : i32, i32
  }
  func.func @transform_1(%arg0: i32) -> (i32, i32) {
    %c0_i32 = arith.constant 0 : i32
    %c0_i32_0 = arith.constant 0 : i32
    %c0_i32_1 = arith.constant 0 : i32
    return %c0_i32, %c0_i32_0 : i32, i32
  }
  func.func @transform_2(%arg0: i32) -> (i32, i32) {
    %c0_i32 = arith.constant 0 : i32
    %c0_i32_0 = arith.constant 0 : i32
    return %arg0, %c0_i32 : i32, i32
  }
}

</mosaic_0001>

<bundles_post_ra>
// kernel: tpu_custom_call.1
= control target key start
LH: loop header
LB: loop body
LE: loop exit
PB: predicated region body
PF: predicated region fallthrough
CT: control target
= control target key end

     0   :  { %7 = vsyncpa [#allocation3], 0  ;;  %s906_s0 = inlined_call_operand.hbm [shape: f32[1024,128], index: 0, kind: input, shape index: {}]   ;;  %s907_s1 = inlined_call_operand.hbm [shape: f32[128,128], index: 1, kind: input, shape index: {}]   ;;  %s908_s2 = inlined_call_operand.hbm [shape: f32[1024,128], index: 2, kind: output, shape index: {}]  }
   0x1   :  { %8 = vsyncpa [#allocation6], 0 }
   0x2   :  { %9 = vsyncpa [#allocation4], 0  ;;  %s14_s11 = sshll.u32 %s906_s0, 4  ;;  %s868_s12 = smov [#allocation2]   ;;  %s15_s11 = int_to_ptr.hbm [resolvable:$true] %s14_s11 }
   0x3   :  { %s16_s13 = sshll.u32 %s868_s12, 4  ;;  %s27_s16 = sshll.u32 %s907_s1, 4  ;;  %s17_s13 = int_to_ptr.vmem [resolvable:$true] %s16_s13  ;;  %s28_s16 = int_to_ptr.hbm [resolvable:$true] %s27_s16 }
   0x4   :  { %s869_s17 = smov 128   ;;  %s870_s18 = smov 8  }
   0x5   :  { %22 = dma.hbm_to_vmem [thread:$0]  %s15_s11, 16384, %s17_s13, [#allocation3], %s869_s17, %s869_s17, %s870_s18  }
   0x6   :  { %s871_s19 = smov [#allocation5]  }
   0x7   :  { %s29_s20 = sshll.u32 %s871_s19, 4  ;;  %s30_s20 = int_to_ptr.vmem [resolvable:$true] %s29_s20 }
   0x8   :  { %35 = dma.hbm_to_vmem [thread:$0]  %s28_s16, 2048, %s30_s20, [#allocation6], %s869_s17, %s869_s17, %s870_s18  }
   0x9   :  { %862 = dma.done.wait [#allocation3], 16384  }
   0xa   :  { %863 = vsyncadd [#allocation3], 4294950912 }
   0xb   :  { %864 = dma.done.wait [#allocation6], 2048  }
   0xc   :  { %865 = vsyncadd [#allocation6], 4294965248  ;;  %v187_v0 = vld [vmem:[#allocation5 + $0x78] sm:$0xff]  ;;  %v186_v1 = vld [vmem:[#allocation5 + $0x70] sm:$0xff]  ;;  %s872_s0 = smov [#allocation7]   ;;  %s723_s23 = sshll.u32 %s908_s2, 4  ;;  %s724_s23 = int_to_ptr.hbm [resolvable:$true] %s723_s23 }
   0xd   :  { %738 = vmatpush.msra.mxu2 %v187_v0  ;;  %739 = vmatpush.msra.mxu3 %v187_v0  ;;  %v185_v2 = vld [vmem:[#allocation5 + $0x68] sm:$0xff]  ;;  %v184_v3 = vld [vmem:[#allocation5 + $0x60] sm:$0xff]  ;;  %v183_v4 = vld [vmem:[#allocation5 + $0x58] sm:$0xff]  ;;  %s721_s1 = sshll.u32 %s872_s0, 4  ;;  %s722_s1 = int_to_ptr.vmem [resolvable:$true] %s721_s1 }
   0xe   :  { %188 = vmatpush.msra.mxu0 %v187_v0  ;;  %737 = vmatpush.msra.mxu1 %v187_v0  ;;  %v182_v5 = vld [vmem:[#allocation5 + $0x50] sm:$0xff]  ;;  %v181_v6 = vld [vmem:[#allocation5 + $0x48] sm:$0xff]  ;;  %v180_v7 = vld [vmem:[#allocation5 + $0x40] sm:$0xff] }
   0xf   :  { %741 = vmatpush.msra.mxu2 %v186_v1  ;;  %742 = vmatpush.msra.mxu3 %v186_v1  ;;  %v179_v8 = vld [vmem:[#allocation5 + $0x38] sm:$0xff]  ;;  %v178_v9 = vld [vmem:[#allocation5 + $0x30] sm:$0xff]  ;;  %v177_v10 = vld [vmem:[#allocation5 + $0x28] sm:$0xff] }
  0x10   :  { %189 = vmatpush.msra.mxu0 %v186_v1  ;;  %740 = vmatpush.msra.mxu1 %v186_v1  ;;  %v176_v11 = vld [vmem:[#allocation5 + $0x20] sm:$0xff]  ;;  %v175_v12 = vld [vmem:[#allocation5 + $0x18] sm:$0xff]  ;;  %v174_v13 = vld [vmem:[#allocation5 + $0x10] sm:$0xff] }
  0x11   :  { %744 = vmatpush.msra.mxu2 %v185_v2  ;;  %745 = vmatpush.msra.mxu3 %v185_v2  ;;  %v173_v14 = vld [vmem:[#allocation5 + $0x8] sm:$0xff]  ;;  %v172_v15 = vld [vmem:[#allocation5] sm:$0xff]  ;;  %v110_v24 = vld [vmem:[#allocation2 + $0x210] sm:$0xff] }
  0x12   :  { %190 = vmatpush.msra.mxu0 %v185_v2  ;;  %743 = vmatpush.msra.mxu1 %v185_v2  ;;  %v108_v16 = vld [vmem:[#allocation2 + $0x200] sm:$0xff]  ;;  %v109_v20 = vld [vmem:[#allocation2 + $0x208] sm:$0xff]  ;;  %v142_v25 = vld [vmem:[#allocation2 + $0x310] sm:$0xff] }
  0x13   :  { %747 = vmatpush.msra.mxu2 %v184_v3  ;;  %748 = vmatpush.msra.mxu3 %v184_v3  ;;  %v140_v17 = vld [vmem:[#allocation2 + $0x300] sm:$0xff]  ;;  %v141_v21 = vld [vmem:[#allocation2 + $0x308] sm:$0xff]  ;;  %v46_v26 = vld [vmem:[#allocation2 + $0x10] sm:$0xff] }
  0x14   :  { %191 = vmatpush.msra.mxu0 %v184_v3  ;;  %746 = vmatpush.msra.mxu1 %v184_v3  ;;  %v44_v18 = vld [vmem:[#allocation2] sm:$0xff]  ;;  %v45_v22 = vld [vmem:[#allocation2 + $0x8] sm:$0xff]  ;;  %v78_v27 = vld [vmem:[#allocation2 + $0x110] sm:$0xff] }
  0x15   :  { %750 = vmatpush.msra.mxu2 %v183_v4  ;;  %751 = vmatpush.msra.mxu3 %v183_v4  ;;  %v76_v19 = vld [vmem:[#allocation2 + $0x100] sm:$0xff]  ;;  %v77_v23 = vld [vmem:[#allocation2 + $0x108] sm:$0xff]  ;;  %v111_v28 = vld [vmem:[#allocation2 + $0x218] sm:$0xff] }
  0x16   :  { %192 = vmatpush.msra.mxu0 %v183_v4  ;;  %749 = vmatpush.msra.mxu1 %v183_v4  ;;  %v143_v29 = vld [vmem:[#allocation2 + $0x318] sm:$0xff]  ;;  %v112_v32 = vld [vmem:[#allocation2 + $0x220] sm:$0xff]  ;;  %v113_v36 = vld [vmem:[#allocation2 + $0x228] sm:$0xff] }
  0x17   :  { %753 = vmatpush.msra.mxu2 %v182_v5  ;;  %754 = vmatpush.msra.mxu3 %v182_v5  ;;  %v47_v30 = vld [vmem:[#allocation2 + $0x18] sm:$0xff]  ;;  %v144_v33 = vld [vmem:[#allocation2 + $0x320] sm:$0xff]  ;;  %v145_v37 = vld [vmem:[#allocation2 + $0x328] sm:$0xff] }
  0x18   :  { %193 = vmatpush.msra.mxu0 %v182_v5  ;;  %752 = vmatpush.msra.mxu1 %v182_v5  ;;  %v79_v31 = vld [vmem:[#allocation2 + $0x118] sm:$0xff]  ;;  %v48_v34 = vld [vmem:[#allocation2 + $0x20] sm:$0xff]  ;;  %v49_v38 = vld [vmem:[#allocation2 + $0x28] sm:$0xff] }
  0x19   :  { %756 = vmatpush.msra.mxu2 %v181_v6  ;;  %757 = vmatpush.msra.mxu3 %v181_v6  ;;  %v80_v35 = vld [vmem:[#allocation2 + $0x120] sm:$0xff]  ;;  %v81_v39 = vld [vmem:[#allocation2 + $0x128] sm:$0xff]  ;;  %v114_v40 = vld [vmem:[#allocation2 + $0x230] sm:$0xff] }
  0x1a   :  { %194 = vmatpush.msra.mxu0 %v181_v6  ;;  %755 = vmatpush.msra.mxu1 %v181_v6  ;;  %v146_v41 = vld [vmem:[#allocation2 + $0x330] sm:$0xff]  ;;  %v115_v44 = vld [vmem:[#allocation2 + $0x238] sm:$0xff]  ;;  %v116_v48 = vld [vmem:[#allocation2 + $0x240] sm:$0xff] }
  0x1b   :  { %759 = vmatpush.msra.mxu2 %v180_v7  ;;  %760 = vmatpush.msra.mxu3 %v180_v7  ;;  %v50_v42 = vld [vmem:[#allocation2 + $0x30] sm:$0xff]  ;;  %v147_v45 = vld [vmem:[#allocation2 + $0x338] sm:$0xff]  ;;  %v148_v49 = vld [vmem:[#allocation2 + $0x340] sm:$0xff] }
  0x1c   :  { %195 = vmatpush.msra.mxu0 %v180_v7  ;;  %758 = vmatpush.msra.mxu1 %v180_v7  ;;  %v82_v43 = vld [vmem:[#allocation2 + $0x130] sm:$0xff]  ;;  %v51_v46 = vld [vmem:[#allocation2 + $0x38] sm:$0xff]  ;;  %v52_v50 = vld [vmem:[#allocation2 + $0x40] sm:$0xff] }
  0x1d   :  { %762 = vmatpush.msra.mxu2 %v179_v8  ;;  %763 = vmatpush.msra.mxu3 %v179_v8  ;;  %v83_v47 = vld [vmem:[#allocation2 + $0x138] sm:$0xff]  ;;  %v84_v51 = vld [vmem:[#allocation2 + $0x140] sm:$0xff]  ;;  %v117_v52 = vld [vmem:[#allocation2 + $0x248] sm:$0xff] }
  0x1e   :  { %196 = vmatpush.msra.mxu0 %v179_v8  ;;  %761 = vmatpush.msra.mxu1 %v179_v8  ;;  %v149_v53 = vld [vmem:[#allocation2 + $0x348] sm:$0xff]  ;;  %v118_v56 = vld [vmem:[#allocation2 + $0x250] sm:$0xff]  ;;  %v119_v60 = vld [vmem:[#allocation2 + $0x258] sm:$0xff] }
  0x1f   :  { %765 = vmatpush.msra.mxu2 %v178_v9  ;;  %766 = vmatpush.msra.mxu3 %v178_v9  ;;  %v53_v54 = vld [vmem:[#allocation2 + $0x48] sm:$0xff]  ;;  %v150_v57 = vld [vmem:[#allocation2 + $0x350] sm:$0xff]  ;;  %v151_v61 = vld [vmem:[#allocation2 + $0x358] sm:$0xff] }
  0x20   :  { %197 = vmatpush.msra.mxu0 %v178_v9  ;;  %764 = vmatpush.msra.mxu1 %v178_v9  ;;  %v85_v55 = vld [vmem:[#allocation2 + $0x148] sm:$0xff]  ;;  %v54_v58 = vld [vmem:[#allocation2 + $0x50] sm:$0xff]  ;;  %v55_v62 = vld [vmem:[#allocation2 + $0x58] sm:$0xff] }
  0x21   :  { %768 = vmatpush.msra.mxu2 %v177_v10  ;;  %769 = vmatpush.msra.mxu3 %v177_v10  ;;  %v86_v59 = vld [vmem:[#allocation2 + $0x150] sm:$0xff]  ;;  %v87_v63 = vld [vmem:[#allocation2 + $0x158] sm:$0xff]  ;;  %v120_v0 = vld [vmem:[#allocation2 + $0x260] sm:$0xff] }
  0x22   :  { %198 = vmatpush.msra.mxu0 %v177_v10  ;;  %767 = vmatpush.msra.mxu1 %v177_v10  ;;  %v152_v1 = vld [vmem:[#allocation2 + $0x360] sm:$0xff]  ;;  %v121_v4 = vld [vmem:[#allocation2 + $0x268] sm:$0xff]  ;;  %v122_v8 = vld [vmem:[#allocation2 + $0x270] sm:$0xff] }
  0x23   :  { %771 = vmatpush.msra.mxu2 %v176_v11  ;;  %772 = vmatpush.msra.mxu3 %v176_v11  ;;  %v56_v2 = vld [vmem:[#allocation2 + $0x60] sm:$0xff]  ;;  %v153_v5 = vld [vmem:[#allocation2 + $0x368] sm:$0xff]  ;;  %v154_v9 = vld [vmem:[#allocation2 + $0x370] sm:$0xff] }
  0x24   :  { %199 = vmatpush.msra.mxu0 %v176_v11  ;;  %770 = vmatpush.msra.mxu1 %v176_v11  ;;  %v88_v3 = vld [vmem:[#allocation2 + $0x160] sm:$0xff]  ;;  %v57_v6 = vld [vmem:[#allocation2 + $0x68] sm:$0xff]  ;;  %v58_v10 = vld [vmem:[#allocation2 + $0x70] sm:$0xff] }
  0x25   :  { %774 = vmatpush.msra.mxu2 %v175_v12  ;;  %775 = vmatpush.msra.mxu3 %v175_v12  ;;  %v89_v7 = vld [vmem:[#allocation2 + $0x168] sm:$0xff]  ;;  %v90_v11 = vld [vmem:[#allocation2 + $0x170] sm:$0xff] }
  0x26   :  { %200 = vmatpush.msra.mxu0 %v175_v12  ;;  %773 = vmatpush.msra.mxu1 %v175_v12  ;;  %v123_v12 = vld [vmem:[#allocation2 + $0x278] sm:$0xff] }
  0x27   :  { %777 = vmatpush.msra.mxu2 %v174_v13  ;;  %778 = vmatpush.msra.mxu3 %v174_v13 }
  0x28   :  { %201 = vmatpush.msra.mxu0 %v174_v13  ;;  %776 = vmatpush.msra.mxu1 %v174_v13  ;;  %v155_v13 = vld [vmem:[#allocation2 + $0x378] sm:$0xff] }
  0x29   :  { %780 = vmatpush.msra.mxu2 %v173_v14  ;;  %781 = vmatpush.msra.mxu3 %v173_v14 }
  0x2a   :  { %202 = vmatpush.msra.mxu0 %v173_v14  ;;  %779 = vmatpush.msra.mxu1 %v173_v14  ;;  %v59_v14 = vld [vmem:[#allocation2 + $0x78] sm:$0xff] }
  0x2b   :  { %783 = vmatpush.msra.mxu2 %v172_v15  ;;  %784 = vmatpush.msra.mxu3 %v172_v15 }
  0x2c   :  { %396 = vmatmul.f32.vlgmr.msra.gmra.mxu2 %v108_v16  ;;  %492 = vmatmul.f32.vlgmr.msra.gmra.mxu3 %v140_v17  ;;  %v124_v16 = vld [vmem:[#allocation2 + $0x280] sm:$0xff] }
  0x2d   :  { %203 = vmatpush.msra.mxu0 %v172_v15  ;;  %782 = vmatpush.msra.mxu1 %v172_v15  ;;  %v91_v15 = vld [vmem:[#allocation2 + $0x178] sm:$0xff]  ;;  %v156_v17 = vld [vmem:[#allocation2 + $0x380] sm:$0xff] }
  0x2e   :  { %204 = vmatmul.f32.vlgmr.msra.gmra.mxu0 %v44_v18  ;;  %300 = vmatmul.f32.vlgmr.msra.gmra.mxu1 %v76_v19 }
  0x34   :  { %399 = vmatmul.f32.gmra.mxu2 %v109_v20  ;;  %495 = vmatmul.f32.gmra.mxu3 %v141_v21  ;;  %v60_v20 = vld [vmem:[#allocation2 + $0x80] sm:$0xff] }
  0x35   :  { %v92_v21 = vld [vmem:[#allocation2 + $0x180] sm:$0xff] }
  0x36   :  { %207 = vmatmul.f32.gmra.mxu0 %v45_v22  ;;  %303 = vmatmul.f32.gmra.mxu1 %v77_v23 }
  0x3c   :  { %402 = vmatmul.f32.gmra.mxu2 %v110_v24  ;;  %498 = vmatmul.f32.gmra.mxu3 %v142_v25  ;;  %v125_v24 = vld [vmem:[#allocation2 + $0x288] sm:$0xff] }
  0x3d   :  { %v157_v25 = vld [vmem:[#allocation2 + $0x388] sm:$0xff] }
  0x3e   :  { %210 = vmatmul.f32.gmra.mxu0 %v46_v26  ;;  %306 = vmatmul.f32.gmra.mxu1 %v78_v27 }
  0x44   :  { %405 = vmatmul.f32.gmra.mxu2 %v111_v28  ;;  %501 = vmatmul.f32.gmra.mxu3 %v143_v29  ;;  %v61_v28 = vld [vmem:[#allocation2 + $0x88] sm:$0xff] }
  0x45   :  { %v93_v29 = vld [vmem:[#allocation2 + $0x188] sm:$0xff] }
  0x46   :  { %213 = vmatmul.f32.gmra.mxu0 %v47_v30  ;;  %309 = vmatmul.f32.gmra.mxu1 %v79_v31 }
  0x4c   :  { %408 = vmatmul.f32.gmra.mxu2 %v112_v32  ;;  %504 = vmatmul.f32.gmra.mxu3 %v144_v33  ;;  %v126_v32 = vld [vmem:[#allocation2 + $0x290] sm:$0xff] }
  0x4d   :  { %v158_v33 = vld [vmem:[#allocation2 + $0x390] sm:$0xff] }
  0x4e   :  { %216 = vmatmul.f32.gmra.mxu0 %v48_v34  ;;  %312 = vmatmul.f32.gmra.mxu1 %v80_v35 }
  0x54   :  { %411 = vmatmul.f32.gmra.mxu2 %v113_v36  ;;  %507 = vmatmul.f32.gmra.mxu3 %v145_v37  ;;  %v62_v36 = vld [vmem:[#allocation2 + $0x90] sm:$0xff] }
  0x55   :  { %v94_v37 = vld [vmem:[#allocation2 + $0x190] sm:$0xff] }
  0x56   :  { %219 = vmatmul.f32.gmra.mxu0 %v49_v38  ;;  %315 = vmatmul.f32.gmra.mxu1 %v81_v39 }
  0x5c   :  { %414 = vmatmul.f32.gmra.mxu2 %v114_v40  ;;  %510 = vmatmul.f32.gmra.mxu3 %v146_v41  ;;  %v127_v40 = vld [vmem:[#allocation2 + $0x298] sm:$0xff] }
  0x5d   :  { %v159_v41 = vld [vmem:[#allocation2 + $0x398] sm:$0xff] }
  0x5e   :  { %222 = vmatmul.f32.gmra.mxu0 %v50_v42  ;;  %318 = vmatmul.f32.gmra.mxu1 %v82_v43 }
  0x64   :  { %417 = vmatmul.f32.gmra.mxu2 %v115_v44  ;;  %513 = vmatmul.f32.gmra.mxu3 %v147_v45  ;;  %v63_v44 = vld [vmem:[#allocation2 + $0x98] sm:$0xff] }
  0x65   :  { %v95_v45 = vld [vmem:[#allocation2 + $0x198] sm:$0xff] }
  0x66   :  { %225 = vmatmul.f32.gmra.mxu0 %v51_v46  ;;  %321 = vmatmul.f32.gmra.mxu1 %v83_v47 }
  0x6c   :  { %420 = vmatmul.f32.gmra.mxu2 %v116_v48  ;;  %516 = vmatmul.f32.gmra.mxu3 %v148_v49  ;;  %v128_v48 = vld [vmem:[#allocation2 + $0x2a0] sm:$0xff] }
  0x6d   :  { %v160_v49 = vld [vmem:[#allocation2 + $0x3a0] sm:$0xff] }
  0x6e   :  { %228 = vmatmul.f32.gmra.mxu0 %v52_v50  ;;  %324 = vmatmul.f32.gmra.mxu1 %v84_v51 }
  0x74   :  { %423 = vmatmul.f32.gmra.mxu2 %v117_v52  ;;  %519 = vmatmul.f32.gmra.mxu3 %v149_v53  ;;  %v64_v52 = vld [vmem:[#allocation2 + $0xa0] sm:$0xff] }
  0x75   :  { %v96_v53 = vld [vmem:[#allocation2 + $0x1a0] sm:$0xff] }
  0x76   :  { %231 = vmatmul.f32.gmra.mxu0 %v53_v54  ;;  %327 = vmatmul.f32.gmra.mxu1 %v85_v55 }
  0x7c   :  { %426 = vmatmul.f32.gmra.mxu2 %v118_v56  ;;  %522 = vmatmul.f32.gmra.mxu3 %v150_v57  ;;  %v129_v56 = vld [vmem:[#allocation2 + $0x2a8] sm:$0xff] }
  0x7d   :  { %v161_v57 = vld [vmem:[#allocation2 + $0x3a8] sm:$0xff] }
  0x7e   :  { %234 = vmatmul.f32.gmra.mxu0 %v54_v58  ;;  %330 = vmatmul.f32.gmra.mxu1 %v86_v59 }
  0x84   :  { %429 = vmatmul.f32.gmra.mxu2 %v119_v60  ;;  %525 = vmatmul.f32.gmra.mxu3 %v151_v61  ;;  %v65_v60 = vld [vmem:[#allocation2 + $0xa8] sm:$0xff] }
  0x85   :  { %v97_v61 = vld [vmem:[#allocation2 + $0x1a8] sm:$0xff] }
  0x86   :  { %237 = vmatmul.f32.gmra.mxu0 %v55_v62  ;;  %333 = vmatmul.f32.gmra.mxu1 %v87_v63 }
  0x8c   :  { %432 = vmatmul.f32.gmra.mxu2 %v120_v0  ;;  %528 = vmatmul.f32.gmra.mxu3 %v152_v1  ;;  %v130_v0 = vld [vmem:[#allocation2 + $0x2b0] sm:$0xff] }
  0x8d   :  { %v162_v1 = vld [vmem:[#allocation2 + $0x3b0] sm:$0xff] }
  0x8e   :  { %240 = vmatmul.f32.gmra.mxu0 %v56_v2  ;;  %336 = vmatmul.f32.gmra.mxu1 %v88_v3 }
  0x94   :  { %435 = vmatmul.f32.gmra.mxu2 %v121_v4  ;;  %531 = vmatmul.f32.gmra.mxu3 %v153_v5  ;;  %v66_v4 = vld [vmem:[#allocation2 + $0xb0] sm:$0xff] }
  0x95   :  { %v98_v5 = vld [vmem:[#allocation2 + $0x1b0] sm:$0xff] }
  0x96   :  { %243 = vmatmul.f32.gmra.mxu0 %v57_v6  ;;  %339 = vmatmul.f32.gmra.mxu1 %v89_v7 }
  0x9c   :  { %438 = vmatmul.f32.gmra.mxu2 %v122_v8  ;;  %534 = vmatmul.f32.gmra.mxu3 %v154_v9  ;;  %v131_v8 = vld [vmem:[#allocation2 + $0x2b8] sm:$0xff] }
  0x9d   :  { %v163_v9 = vld [vmem:[#allocation2 + $0x3b8] sm:$0xff] }
  0x9e   :  { %246 = vmatmul.f32.gmra.mxu0 %v58_v10  ;;  %342 = vmatmul.f32.gmra.mxu1 %v90_v11 }
  0xa4   :  { %441 = vmatmul.f32.gmra.mxu2 %v123_v12  ;;  %537 = vmatmul.f32.gmra.mxu3 %v155_v13  ;;  %v67_v12 = vld [vmem:[#allocation2 + $0xb8] sm:$0xff] }
  0xa5   :  { %v99_v13 = vld [vmem:[#allocation2 + $0x1b8] sm:$0xff] }
  0xa6   :  { %249 = vmatmul.f32.gmra.mxu0 %v59_v14  ;;  %345 = vmatmul.f32.gmra.mxu1 %v91_v15 }
  0xab   :  { %v205_v18 = vpop.f32.mrf.mxu0  ;;  %v301_v19 = vpop.f32.mrf.mxu1 }
  0xac   :  { %444 = vmatmul.f32.gmra.mxu2 %v124_v16  ;;  %540 = vmatmul.f32.gmra.mxu3 %v156_v17  ;;  %589 = vst [vmem:[#allocation7] sm:$0xff] %v205_v18  ;;  %v132_v16 = vld [vmem:[#allocation2 + $0x2c0] sm:$0xff] }
  0xad   :  { %621 = vst [vmem:[#allocation7 + $0x100] sm:$0xff] %v301_v19  ;;  %v164_v17 = vld [vmem:[#allocation2 + $0x3c0] sm:$0xff] }
  0xae   :  { %252 = vmatmul.f32.gmra.mxu0 %v60_v20  ;;  %348 = vmatmul.f32.gmra.mxu1 %v92_v21  ;;  %v68_v20 = vld [vmem:[#allocation2 + $0xc0] sm:$0xff] }
  0xaf   :  { %v397_v22 = vpop.f32.mrf.mxu2  ;;  %v493_v23 = vpop.f32.mrf.mxu3  ;;  %v100_v21 = vld [vmem:[#allocation2 + $0x1c0] sm:$0xff] }
  0xb0   :  { %653 = vst [vmem:[#allocation7 + $0x200] sm:$0xff] %v397_v22 }
  0xb1   :  { %685 = vst [vmem:[#allocation7 + $0x300] sm:$0xff] %v493_v23 }
  0xb3   :  { %v208_v26 = vpop.f32.mrf.mxu0  ;;  %v304_v27 = vpop.f32.mrf.mxu1 }
  0xb4   :  { %447 = vmatmul.f32.gmra.mxu2 %v125_v24  ;;  %543 = vmatmul.f32.gmra.mxu3 %v157_v25  ;;  %590 = vst [vmem:[#allocation7 + $0x8] sm:$0xff] %v208_v26  ;;  %v133_v24 = vld [vmem:[#allocation2 + $0x2c8] sm:$0xff] }
  0xb5   :  { %622 = vst [vmem:[#allocation7 + $0x108] sm:$0xff] %v304_v27  ;;  %v165_v25 = vld [vmem:[#allocation2 + $0x3c8] sm:$0xff] }
  0xb6   :  { %255 = vmatmul.f32.gmra.mxu0 %v61_v28  ;;  %351 = vmatmul.f32.gmra.mxu1 %v93_v29  ;;  %v69_v28 = vld [vmem:[#allocation2 + $0xc8] sm:$0xff] }
  0xb7   :  { %v400_v30 = vpop.f32.mrf.mxu2  ;;  %v496_v31 = vpop.f32.mrf.mxu3  ;;  %v101_v29 = vld [vmem:[#allocation2 + $0x1c8] sm:$0xff] }
  0xb8   :  { %654 = vst [vmem:[#allocation7 + $0x208] sm:$0xff] %v400_v30 }
  0xb9   :  { %686 = vst [vmem:[#allocation7 + $0x308] sm:$0xff] %v496_v31 }
  0xbb   :  { %v211_v34 = vpop.f32.mrf.mxu0  ;;  %v307_v35 = vpop.f32.mrf.mxu1 }
  0xbc   :  { %450 = vmatmul.f32.gmra.mxu2 %v126_v32  ;;  %546 = vmatmul.f32.gmra.mxu3 %v158_v33  ;;  %591 = vst [vmem:[#allocation7 + $0x10] sm:$0xff] %v211_v34  ;;  %v134_v32 = vld [vmem:[#allocation2 + $0x2d0] sm:$0xff] }
  0xbd   :  { %623 = vst [vmem:[#allocation7 + $0x110] sm:$0xff] %v307_v35  ;;  %v166_v33 = vld [vmem:[#allocation2 + $0x3d0] sm:$0xff] }
  0xbe   :  { %258 = vmatmul.f32.gmra.mxu0 %v62_v36  ;;  %354 = vmatmul.f32.gmra.mxu1 %v94_v37  ;;  %v70_v36 = vld [vmem:[#allocation2 + $0xd0] sm:$0xff] }
  0xbf   :  { %v403_v38 = vpop.f32.mrf.mxu2  ;;  %v499_v39 = vpop.f32.mrf.mxu3  ;;  %v102_v37 = vld [vmem:[#allocation2 + $0x1d0] sm:$0xff] }
  0xc0   :  { %655 = vst [vmem:[#allocation7 + $0x210] sm:$0xff] %v403_v38 }
  0xc1   :  { %687 = vst [vmem:[#allocation7 + $0x310] sm:$0xff] %v499_v39 }
  0xc3   :  { %v214_v42 = vpop.f32.mrf.mxu0  ;;  %v310_v43 = vpop.f32.mrf.mxu1 }
  0xc4   :  { %453 = vmatmul.f32.gmra.mxu2 %v127_v40  ;;  %549 = vmatmul.f32.gmra.mxu3 %v159_v41  ;;  %592 = vst [vmem:[#allocation7 + $0x18] sm:$0xff] %v214_v42  ;;  %v135_v40 = vld [vmem:[#allocation2 + $0x2d8] sm:$0xff] }
  0xc5   :  { %624 = vst [vmem:[#allocation7 + $0x118] sm:$0xff] %v310_v43  ;;  %v167_v41 = vld [vmem:[#allocation2 + $0x3d8] sm:$0xff] }
  0xc6   :  { %261 = vmatmul.f32.gmra.mxu0 %v63_v44  ;;  %357 = vmatmul.f32.gmra.mxu1 %v95_v45  ;;  %v71_v44 = vld [vmem:[#allocation2 + $0xd8] sm:$0xff] }
  0xc7   :  { %v406_v46 = vpop.f32.mrf.mxu2  ;;  %v502_v47 = vpop.f32.mrf.mxu3  ;;  %v103_v45 = vld [vmem:[#allocation2 + $0x1d8] sm:$0xff] }
  0xc8   :  { %656 = vst [vmem:[#allocation7 + $0x218] sm:$0xff] %v406_v46 }
  0xc9   :  { %688 = vst [vmem:[#allocation7 + $0x318] sm:$0xff] %v502_v47 }
  0xcb   :  { %v217_v50 = vpop.f32.mrf.mxu0  ;;  %v313_v51 = vpop.f32.mrf.mxu1 }
  0xcc   :  { %456 = vmatmul.f32.gmra.mxu2 %v128_v48  ;;  %552 = vmatmul.f32.gmra.mxu3 %v160_v49  ;;  %593 = vst [vmem:[#allocation7 + $0x20] sm:$0xff] %v217_v50  ;;  %v136_v48 = vld [vmem:[#allocation2 + $0x2e0] sm:$0xff] }
  0xcd   :  { %625 = vst [vmem:[#allocation7 + $0x120] sm:$0xff] %v313_v51  ;;  %v168_v49 = vld [vmem:[#allocation2 + $0x3e0] sm:$0xff] }
  0xce   :  { %264 = vmatmul.f32.gmra.mxu0 %v64_v52  ;;  %360 = vmatmul.f32.gmra.mxu1 %v96_v53  ;;  %v72_v52 = vld [vmem:[#allocation2 + $0xe0] sm:$0xff] }
  0xcf   :  { %v409_v54 = vpop.f32.mrf.mxu2  ;;  %v505_v55 = vpop.f32.mrf.mxu3  ;;  %v104_v53 = vld [vmem:[#allocation2 + $0x1e0] sm:$0xff] }
  0xd0   :  { %657 = vst [vmem:[#allocation7 + $0x220] sm:$0xff] %v409_v54 }
  0xd1   :  { %689 = vst [vmem:[#allocation7 + $0x320] sm:$0xff] %v505_v55 }
  0xd3   :  { %v220_v58 = vpop.f32.mrf.mxu0  ;;  %v316_v59 = vpop.f32.mrf.mxu1 }
  0xd4   :  { %459 = vmatmul.f32.gmra.mxu2 %v129_v56  ;;  %555 = vmatmul.f32.gmra.mxu3 %v161_v57  ;;  %594 = vst [vmem:[#allocation7 + $0x28] sm:$0xff] %v220_v58  ;;  %v137_v56 = vld [vmem:[#allocation2 + $0x2e8] sm:$0xff] }
  0xd5   :  { %626 = vst [vmem:[#allocation7 + $0x128] sm:$0xff] %v316_v59  ;;  %v169_v57 = vld [vmem:[#allocation2 + $0x3e8] sm:$0xff] }
  0xd6   :  { %267 = vmatmul.f32.gmra.mxu0 %v65_v60  ;;  %363 = vmatmul.f32.gmra.mxu1 %v97_v61  ;;  %v73_v60 = vld [vmem:[#allocation2 + $0xe8] sm:$0xff] }
  0xd7   :  { %v412_v62 = vpop.f32.mrf.mxu2  ;;  %v508_v63 = vpop.f32.mrf.mxu3  ;;  %v105_v61 = vld [vmem:[#allocation2 + $0x1e8] sm:$0xff] }
  0xd8   :  { %658 = vst [vmem:[#allocation7 + $0x228] sm:$0xff] %v412_v62 }
  0xd9   :  { %690 = vst [vmem:[#allocation7 + $0x328] sm:$0xff] %v508_v63 }
  0xdb   :  { %v223_v2 = vpop.f32.mrf.mxu0  ;;  %v319_v3 = vpop.f32.mrf.mxu1 }
  0xdc   :  { %462 = vmatmul.f32.gmra.mxu2 %v130_v0  ;;  %558 = vmatmul.f32.gmra.mxu3 %v162_v1  ;;  %595 = vst [vmem:[#allocation7 + $0x30] sm:$0xff] %v223_v2  ;;  %v138_v0 = vld [vmem:[#allocation2 + $0x2f0] sm:$0xff] }
  0xdd   :  { %627 = vst [vmem:[#allocation7 + $0x130] sm:$0xff] %v319_v3  ;;  %v170_v1 = vld [vmem:[#allocation2 + $0x3f0] sm:$0xff] }
  0xde   :  { %270 = vmatmul.f32.gmra.mxu0 %v66_v4  ;;  %366 = vmatmul.f32.gmra.mxu1 %v98_v5  ;;  %v74_v4 = vld [vmem:[#allocation2 + $0xf0] sm:$0xff] }
  0xdf   :  { %v415_v6 = vpop.f32.mrf.mxu2  ;;  %v511_v7 = vpop.f32.mrf.mxu3  ;;  %v106_v5 = vld [vmem:[#allocation2 + $0x1f0] sm:$0xff] }
  0xe0   :  { %659 = vst [vmem:[#allocation7 + $0x230] sm:$0xff] %v415_v6 }
  0xe1   :  { %691 = vst [vmem:[#allocation7 + $0x330] sm:$0xff] %v511_v7 }
  0xe3   :  { %v226_v10 = vpop.f32.mrf.mxu0  ;;  %v322_v11 = vpop.f32.mrf.mxu1 }
  0xe4   :  { %465 = vmatmul.f32.gmra.mxu2 %v131_v8  ;;  %561 = vmatmul.f32.gmra.mxu3 %v163_v9  ;;  %596 = vst [vmem:[#allocation7 + $0x38] sm:$0xff] %v226_v10  ;;  %v139_v8 = vld [vmem:[#allocation2 + $0x2f8] sm:$0xff] }
  0xe5   :  { %628 = vst [vmem:[#allocation7 + $0x138] sm:$0xff] %v322_v11  ;;  %v171_v9 = vld [vmem:[#allocation2 + $0x3f8] sm:$0xff] }
  0xe6   :  { %273 = vmatmul.f32.gmra.mxu0 %v67_v12  ;;  %369 = vmatmul.f32.gmra.mxu1 %v99_v13  ;;  %v75_v12 = vld [vmem:[#allocation2 + $0xf8] sm:$0xff] }
  0xe7   :  { %v418_v14 = vpop.f32.mrf.mxu2  ;;  %v514_v15 = vpop.f32.mrf.mxu3  ;;  %v107_v13 = vld [vmem:[#allocation2 + $0x1f8] sm:$0xff] }
  0xe8   :  { %660 = vst [vmem:[#allocation7 + $0x238] sm:$0xff] %v418_v14 }
  0xe9   :  { %692 = vst [vmem:[#allocation7 + $0x338] sm:$0xff] %v514_v15 }
  0xeb   :  { %v229_v18 = vpop.f32.mrf.mxu0  ;;  %v325_v19 = vpop.f32.mrf.mxu1 }
  0xec   :  { %468 = vmatmul.f32.gmra.mxu2 %v132_v16  ;;  %564 = vmatmul.f32.gmra.mxu3 %v164_v17  ;;  %597 = vst [vmem:[#allocation7 + $0x40] sm:$0xff] %v229_v18 }
  0xed   :  { %629 = vst [vmem:[#allocation7 + $0x140] sm:$0xff] %v325_v19 }
  0xee   :  { %276 = vmatmul.f32.gmra.mxu0 %v68_v20  ;;  %372 = vmatmul.f32.gmra.mxu1 %v100_v21 }
  0xef   :  { %v421_v22 = vpop.f32.mrf.mxu2  ;;  %v517_v23 = vpop.f32.mrf.mxu3 }
  0xf0   :  { %661 = vst [vmem:[#allocation7 + $0x240] sm:$0xff] %v421_v22 }
  0xf1   :  { %693 = vst [vmem:[#allocation7 + $0x340] sm:$0xff] %v517_v23 }
  0xf3   :  { %v232_v26 = vpop.f32.mrf.mxu0  ;;  %v328_v27 = vpop.f32.mrf.mxu1 }
  0xf4   :  { %471 = vmatmul.f32.gmra.mxu2 %v133_v24  ;;  %567 = vmatmul.f32.gmra.mxu3 %v165_v25  ;;  %598 = vst [vmem:[#allocation7 + $0x48] sm:$0xff] %v232_v26 }
  0xf5   :  { %630 = vst [vmem:[#allocation7 + $0x148] sm:$0xff] %v328_v27 }
  0xf6   :  { %279 = vmatmul.f32.gmra.mxu0 %v69_v28  ;;  %375 = vmatmul.f32.gmra.mxu1 %v101_v29 }
  0xf7   :  { %v424_v30 = vpop.f32.mrf.mxu2  ;;  %v520_v31 = vpop.f32.mrf.mxu3 }
  0xf8   :  { %662 = vst [vmem:[#allocation7 + $0x248] sm:$0xff] %v424_v30 }
  0xf9   :  { %694 = vst [vmem:[#allocation7 + $0x348] sm:$0xff] %v520_v31 }
  0xfb   :  { %v235_v34 = vpop.f32.mrf.mxu0  ;;  %v331_v35 = vpop.f32.mrf.mxu1 }
  0xfc   :  { %474 = vmatmul.f32.gmra.mxu2 %v134_v32  ;;  %570 = vmatmul.f32.gmra.mxu3 %v166_v33  ;;  %599 = vst [vmem:[#allocation7 + $0x50] sm:$0xff] %v235_v34 }
  0xfd   :  { %631 = vst [vmem:[#allocation7 + $0x150] sm:$0xff] %v331_v35 }
  0xfe   :  { %282 = vmatmul.f32.gmra.mxu0 %v70_v36  ;;  %378 = vmatmul.f32.gmra.mxu1 %v102_v37 }
  0xff   :  { %v427_v38 = vpop.f32.mrf.mxu2  ;;  %v523_v39 = vpop.f32.mrf.mxu3 }
 0x100   :  { %663 = vst [vmem:[#allocation7 + $0x250] sm:$0xff] %v427_v38 }
 0x101   :  { %695 = vst [vmem:[#allocation7 + $0x350] sm:$0xff] %v523_v39 }
 0x103   :  { %v238_v42 = vpop.f32.mrf.mxu0  ;;  %v334_v43 = vpop.f32.mrf.mxu1 }
 0x104   :  { %477 = vmatmul.f32.gmra.mxu2 %v135_v40  ;;  %573 = vmatmul.f32.gmra.mxu3 %v167_v41  ;;  %600 = vst [vmem:[#allocation7 + $0x58] sm:$0xff] %v238_v42 }
 0x105   :  { %632 = vst [vmem:[#allocation7 + $0x158] sm:$0xff] %v334_v43 }
 0x106   :  { %285 = vmatmul.f32.gmra.mxu0 %v71_v44  ;;  %381 = vmatmul.f32.gmra.mxu1 %v103_v45 }
 0x107   :  { %v430_v46 = vpop.f32.mrf.mxu2  ;;  %v526_v47 = vpop.f32.mrf.mxu3 }
 0x108   :  { %664 = vst [vmem:[#allocation7 + $0x258] sm:$0xff] %v430_v46 }
 0x109   :  { %696 = vst [vmem:[#allocation7 + $0x358] sm:$0xff] %v526_v47 }
 0x10b   :  { %v241_v50 = vpop.f32.mrf.mxu0  ;;  %v337_v51 = vpop.f32.mrf.mxu1 }
 0x10c   :  { %480 = vmatmul.f32.gmra.mxu2 %v136_v48  ;;  %576 = vmatmul.f32.gmra.mxu3 %v168_v49  ;;  %601 = vst [vmem:[#allocation7 + $0x60] sm:$0xff] %v241_v50 }
 0x10d   :  { %633 = vst [vmem:[#allocation7 + $0x160] sm:$0xff] %v337_v51 }
 0x10e   :  { %288 = vmatmul.f32.gmra.mxu0 %v72_v52  ;;  %384 = vmatmul.f32.gmra.mxu1 %v104_v53 }
 0x10f   :  { %v433_v54 = vpop.f32.mrf.mxu2  ;;  %v529_v55 = vpop.f32.mrf.mxu3 }
 0x110   :  { %665 = vst [vmem:[#allocation7 + $0x260] sm:$0xff] %v433_v54 }
 0x111   :  { %697 = vst [vmem:[#allocation7 + $0x360] sm:$0xff] %v529_v55 }
 0x113   :  { %v244_v58 = vpop.f32.mrf.mxu0  ;;  %v340_v59 = vpop.f32.mrf.mxu1 }
 0x114   :  { %483 = vmatmul.f32.gmra.mxu2 %v137_v56  ;;  %579 = vmatmul.f32.gmra.mxu3 %v169_v57  ;;  %602 = vst [vmem:[#allocation7 + $0x68] sm:$0xff] %v244_v58 }
 0x115   :  { %634 = vst [vmem:[#allocation7 + $0x168] sm:$0xff] %v340_v59 }
 0x116   :  { %291 = vmatmul.f32.gmra.mxu0 %v73_v60  ;;  %387 = vmatmul.f32.gmra.mxu1 %v105_v61 }
 0x117   :  { %v436_v62 = vpop.f32.mrf.mxu2  ;;  %v532_v63 = vpop.f32.mrf.mxu3 }
 0x118   :  { %666 = vst [vmem:[#allocation7 + $0x268] sm:$0xff] %v436_v62 }
 0x119   :  { %698 = vst [vmem:[#allocation7 + $0x368] sm:$0xff] %v532_v63 }
 0x11b   :  { %v247_v2 = vpop.f32.mrf.mxu0  ;;  %v343_v3 = vpop.f32.mrf.mxu1 }
 0x11c   :  { %486 = vmatmul.f32.gmra.mxu2 %v138_v0  ;;  %582 = vmatmul.f32.gmra.mxu3 %v170_v1  ;;  %603 = vst [vmem:[#allocation7 + $0x70] sm:$0xff] %v247_v2 }
 0x11d   :  { %635 = vst [vmem:[#allocation7 + $0x170] sm:$0xff] %v343_v3 }
 0x11e   :  { %294 = vmatmul.f32.gmra.mxu0 %v74_v4  ;;  %390 = vmatmul.f32.gmra.mxu1 %v106_v5 }
 0x11f   :  { %v439_v6 = vpop.f32.mrf.mxu2  ;;  %v535_v7 = vpop.f32.mrf.mxu3 }
 0x120   :  { %667 = vst [vmem:[#allocation7 + $0x270] sm:$0xff] %v439_v6 }
 0x121   :  { %699 = vst [vmem:[#allocation7 + $0x370] sm:$0xff] %v535_v7 }
 0x123   :  { %v250_v10 = vpop.f32.mrf.mxu0  ;;  %v346_v11 = vpop.f32.mrf.mxu1 }
 0x124   :  { %489 = vmatmul.f32.gmra.mxu2 %v139_v8  ;;  %585 = vmatmul.f32.gmra.mxu3 %v171_v9  ;;  %604 = vst [vmem:[#allocation7 + $0x78] sm:$0xff] %v250_v10 }
 0x125   :  { %636 = vst [vmem:[#allocation7 + $0x178] sm:$0xff] %v346_v11 }
 0x126   :  { %297 = vmatmul.f32.gmra.mxu0 %v75_v12  ;;  %393 = vmatmul.f32.gmra.mxu1 %v107_v13 }
 0x127   :  { %v442_v14 = vpop.f32.mrf.mxu2  ;;  %v538_v15 = vpop.f32.mrf.mxu3 }
 0x128   :  { %668 = vst [vmem:[#allocation7 + $0x278] sm:$0xff] %v442_v14 }
 0x129   :  { %700 = vst [vmem:[#allocation7 + $0x378] sm:$0xff] %v538_v15 }
 0x12b   :  { %v253_v16 = vpop.f32.mrf.mxu0  ;;  %v349_v17 = vpop.f32.mrf.mxu1 }
 0x12c   :  { %605 = vst [vmem:[#allocation7 + $0x80] sm:$0xff] %v253_v16 }
 0x12d   :  { %637 = vst [vmem:[#allocation7 + $0x180] sm:$0xff] %v349_v17 }
 0x12f   :  { %v445_v18 = vpop.f32.mrf.mxu2  ;;  %v541_v19 = vpop.f32.mrf.mxu3 }
 0x130   :  { %669 = vst [vmem:[#allocation7 + $0x280] sm:$0xff] %v445_v18 }
 0x131   :  { %701 = vst [vmem:[#allocation7 + $0x380] sm:$0xff] %v541_v19 }
 0x133   :  { %v256_v20 = vpop.f32.mrf.mxu0  ;;  %v352_v21 = vpop.f32.mrf.mxu1 }
 0x134   :  { %606 = vst [vmem:[#allocation7 + $0x88] sm:$0xff] %v256_v20 }
 0x135   :  { %638 = vst [vmem:[#allocation7 + $0x188] sm:$0xff] %v352_v21 }
 0x137   :  { %v448_v22 = vpop.f32.mrf.mxu2  ;;  %v544_v23 = vpop.f32.mrf.mxu3 }
 0x138   :  { %670 = vst [vmem:[#allocation7 + $0x288] sm:$0xff] %v448_v22 }
 0x139   :  { %702 = vst [vmem:[#allocation7 + $0x388] sm:$0xff] %v544_v23 }
 0x13b   :  { %v259_v24 = vpop.f32.mrf.mxu0  ;;  %v355_v25 = vpop.f32.mrf.mxu1 }
 0x13c   :  { %607 = vst [vmem:[#allocation7 + $0x90] sm:$0xff] %v259_v24 }
 0x13d   :  { %639 = vst [vmem:[#allocation7 + $0x190] sm:$0xff] %v355_v25 }
 0x13f   :  { %v451_v26 = vpop.f32.mrf.mxu2  ;;  %v547_v27 = vpop.f32.mrf.mxu3 }
 0x140   :  { %671 = vst [vmem:[#allocation7 + $0x290] sm:$0xff] %v451_v26 }
 0x141   :  { %703 = vst [vmem:[#allocation7 + $0x390] sm:$0xff] %v547_v27 }
 0x143   :  { %v262_v28 = vpop.f32.mrf.mxu0  ;;  %v358_v29 = vpop.f32.mrf.mxu1 }
 0x144   :  { %608 = vst [vmem:[#allocation7 + $0x98] sm:$0xff] %v262_v28 }
 0x145   :  { %640 = vst [vmem:[#allocation7 + $0x198] sm:$0xff] %v358_v29 }
 0x147   :  { %v454_v30 = vpop.f32.mrf.mxu2  ;;  %v550_v31 = vpop.f32.mrf.mxu3 }
 0x148   :  { %672 = vst [vmem:[#allocation7 + $0x298] sm:$0xff] %v454_v30 }
 0x149   :  { %704 = vst [vmem:[#allocation7 + $0x398] sm:$0xff] %v550_v31 }
 0x14b   :  { %v265_v32 = vpop.f32.mrf.mxu0  ;;  %v361_v33 = vpop.f32.mrf.mxu1 }
 0x14c   :  { %609 = vst [vmem:[#allocation7 + $0xa0] sm:$0xff] %v265_v32 }
 0x14d   :  { %641 = vst [vmem:[#allocation7 + $0x1a0] sm:$0xff] %v361_v33 }
 0x14f   :  { %v457_v34 = vpop.f32.mrf.mxu2  ;;  %v553_v35 = vpop.f32.mrf.mxu3 }
 0x150   :  { %673 = vst [vmem:[#allocation7 + $0x2a0] sm:$0xff] %v457_v34 }
 0x151   :  { %705 = vst [vmem:[#allocation7 + $0x3a0] sm:$0xff] %v553_v35 }
 0x153   :  { %v268_v36 = vpop.f32.mrf.mxu0  ;;  %v364_v37 = vpop.f32.mrf.mxu1 }
 0x154   :  { %610 = vst [vmem:[#allocation7 + $0xa8] sm:$0xff] %v268_v36 }
 0x155   :  { %642 = vst [vmem:[#allocation7 + $0x1a8] sm:$0xff] %v364_v37 }
 0x157   :  { %v460_v38 = vpop.f32.mrf.mxu2  ;;  %v556_v39 = vpop.f32.mrf.mxu3 }
 0x158   :  { %674 = vst [vmem:[#allocation7 + $0x2a8] sm:$0xff] %v460_v38 }
 0x159   :  { %706 = vst [vmem:[#allocation7 + $0x3a8] sm:$0xff] %v556_v39 }
 0x15b   :  { %v271_v40 = vpop.f32.mrf.mxu0  ;;  %v367_v41 = vpop.f32.mrf.mxu1 }
 0x15c   :  { %611 = vst [vmem:[#allocation7 + $0xb0] sm:$0xff] %v271_v40 }
 0x15d   :  { %643 = vst [vmem:[#allocation7 + $0x1b0] sm:$0xff] %v367_v41 }
 0x15f   :  { %v463_v42 = vpop.f32.mrf.mxu2  ;;  %v559_v43 = vpop.f32.mrf.mxu3 }
 0x160   :  { %675 = vst [vmem:[#allocation7 + $0x2b0] sm:$0xff] %v463_v42 }
 0x161   :  { %707 = vst [vmem:[#allocation7 + $0x3b0] sm:$0xff] %v559_v43 }
 0x163   :  { %v274_v44 = vpop.f32.mrf.mxu0  ;;  %v370_v45 = vpop.f32.mrf.mxu1 }
 0x164   :  { %612 = vst [vmem:[#allocation7 + $0xb8] sm:$0xff] %v274_v44 }
 0x165   :  { %644 = vst [vmem:[#allocation7 + $0x1b8] sm:$0xff] %v370_v45 }
 0x167   :  { %v466_v46 = vpop.f32.mrf.mxu2  ;;  %v562_v47 = vpop.f32.mrf.mxu3 }
 0x168   :  { %676 = vst [vmem:[#allocation7 + $0x2b8] sm:$0xff] %v466_v46 }
 0x169   :  { %708 = vst [vmem:[#allocation7 + $0x3b8] sm:$0xff] %v562_v47 }
 0x16b   :  { %v277_v48 = vpop.f32.mrf.mxu0  ;;  %v373_v49 = vpop.f32.mrf.mxu1 }
 0x16c   :  { %613 = vst [vmem:[#allocation7 + $0xc0] sm:$0xff] %v277_v48 }
 0x16d   :  { %645 = vst [vmem:[#allocation7 + $0x1c0] sm:$0xff] %v373_v49 }
 0x16f   :  { %v469_v50 = vpop.f32.mrf.mxu2  ;;  %v565_v51 = vpop.f32.mrf.mxu3 }
 0x170   :  { %677 = vst [vmem:[#allocation7 + $0x2c0] sm:$0xff] %v469_v50 }
 0x171   :  { %709 = vst [vmem:[#allocation7 + $0x3c0] sm:$0xff] %v565_v51 }
 0x173   :  { %v280_v52 = vpop.f32.mrf.mxu0  ;;  %v376_v53 = vpop.f32.mrf.mxu1 }
 0x174   :  { %614 = vst [vmem:[#allocation7 + $0xc8] sm:$0xff] %v280_v52 }
 0x175   :  { %646 = vst [vmem:[#allocation7 + $0x1c8] sm:$0xff] %v376_v53 }
 0x177   :  { %v472_v54 = vpop.f32.mrf.mxu2  ;;  %v568_v55 = vpop.f32.mrf.mxu3 }
 0x178   :  { %678 = vst [vmem:[#allocation7 + $0x2c8] sm:$0xff] %v472_v54 }
 0x179   :  { %710 = vst [vmem:[#allocation7 + $0x3c8] sm:$0xff] %v568_v55 }
 0x17b   :  { %v283_v56 = vpop.f32.mrf.mxu0  ;;  %v379_v57 = vpop.f32.mrf.mxu1 }
 0x17c   :  { %615 = vst [vmem:[#allocation7 + $0xd0] sm:$0xff] %v283_v56 }
 0x17d   :  { %647 = vst [vmem:[#allocation7 + $0x1d0] sm:$0xff] %v379_v57 }
 0x17f   :  { %v475_v58 = vpop.f32.mrf.mxu2  ;;  %v571_v59 = vpop.f32.mrf.mxu3 }
 0x180   :  { %679 = vst [vmem:[#allocation7 + $0x2d0] sm:$0xff] %v475_v58 }
 0x181   :  { %711 = vst [vmem:[#allocation7 + $0x3d0] sm:$0xff] %v571_v59 }
 0x183   :  { %v286_v60 = vpop.f32.mrf.mxu0  ;;  %v382_v61 = vpop.f32.mrf.mxu1 }
 0x184   :  { %616 = vst [vmem:[#allocation7 + $0xd8] sm:$0xff] %v286_v60 }
 0x185   :  { %648 = vst [vmem:[#allocation7 + $0x1d8] sm:$0xff] %v382_v61 }
 0x187   :  { %v478_v62 = vpop.f32.mrf.mxu2  ;;  %v574_v63 = vpop.f32.mrf.mxu3 }
 0x188   :  { %680 = vst [vmem:[#allocation7 + $0x2d8] sm:$0xff] %v478_v62 }
 0x189   :  { %712 = vst [vmem:[#allocation7 + $0x3d8] sm:$0xff] %v574_v63 }
 0x18b   :  { %v289_v0 = vpop.f32.mrf.mxu0  ;;  %v385_v1 = vpop.f32.mrf.mxu1 }
 0x18c   :  { %617 = vst [vmem:[#allocation7 + $0xe0] sm:$0xff] %v289_v0 }
 0x18d   :  { %649 = vst [vmem:[#allocation7 + $0x1e0] sm:$0xff] %v385_v1 }
 0x18f   :  { %v481_v2 = vpop.f32.mrf.mxu2  ;;  %v577_v3 = vpop.f32.mrf.mxu3 }
 0x190   :  { %681 = vst [vmem:[#allocation7 + $0x2e0] sm:$0xff] %v481_v2 }
 0x191   :  { %713 = vst [vmem:[#allocation7 + $0x3e0] sm:$0xff] %v577_v3 }
 0x193   :  { %v292_v4 = vpop.f32.mrf.mxu0  ;;  %v388_v5 = vpop.f32.mrf.mxu1 }
 0x194   :  { %618 = vst [vmem:[#allocation7 + $0xe8] sm:$0xff] %v292_v4 }
 0x195   :  { %650 = vst [vmem:[#allocation7 + $0x1e8] sm:$0xff] %v388_v5 }
 0x197   :  { %v484_v6 = vpop.f32.mrf.mxu2  ;;  %v580_v7 = vpop.f32.mrf.mxu3 }
 0x198   :  { %682 = vst [vmem:[#allocation7 + $0x2e8] sm:$0xff] %v484_v6 }
 0x199   :  { %714 = vst [vmem:[#allocation7 + $0x3e8] sm:$0xff] %v580_v7 }
 0x19b   :  { %v295_v8 = vpop.f32.mrf.mxu0  ;;  %v391_v9 = vpop.f32.mrf.mxu1 }
 0x19c   :  { %619 = vst [vmem:[#allocation7 + $0xf0] sm:$0xff] %v295_v8 }
 0x19d   :  { %651 = vst [vmem:[#allocation7 + $0x1f0] sm:$0xff] %v391_v9 }
 0x19f   :  { %v487_v10 = vpop.f32.mrf.mxu2  ;;  %v583_v11 = vpop.f32.mrf.mxu3 }
 0x1a0   :  { %683 = vst [vmem:[#allocation7 + $0x2f0] sm:$0xff] %v487_v10 }
 0x1a1   :  { %715 = vst [vmem:[#allocation7 + $0x3f0] sm:$0xff] %v583_v11 }
 0x1a3   :  { %v298_v12 = vpop.f32.mrf.mxu0  ;;  %v394_v13 = vpop.f32.mrf.mxu1 }
 0x1a4   :  { %620 = vst [vmem:[#allocation7 + $0xf8] sm:$0xff] %v298_v12 }
 0x1a5   :  { %652 = vst [vmem:[#allocation7 + $0x1f8] sm:$0xff] %v394_v13 }
 0x1a7   :  { %v490_v14 = vpop.f32.mrf.mxu2  ;;  %v586_v15 = vpop.f32.mrf.mxu3 }
 0x1a8   :  { %684 = vst [vmem:[#allocation7 + $0x2f8] sm:$0xff] %v490_v14 }
 0x1a9   :  { %716 = vst [vmem:[#allocation7 + $0x3f8] sm:$0xff] %v586_v15 }
 0x1aa   :  { %729 = dma.vmem_to_hbm [thread:$0]  %s722_s1, 16384, %s724_s23, [#allocation4], %s869_s17, %s869_s17, %s870_s18  }
 0x1ab   :  { %866 = dma.done.wait [#allocation4], 16384  }
 0x1ac   :  { %867 = vsyncadd [#allocation4], 4294950912 }
 0x1ad   :  { %734 = vsyncpa [#allocation3], 1 }
 0x1ae   :  { %735 = vsyncpa [#allocation6], 1 }
 0x1af   :  { %736 = vsyncpa [#allocation4], 1 }

</bundles_post_ra>
